<compile_context>
chip_gen: v7x
topology: tpu7x:2x2x1
jax: 0.10.0
libtpu: 0.0.40
codegen_flags: <defaults>
</compile_context>

<pallas_src>
import jax
import jax.numpy as jnp
from jax.experimental import pallas as pl
from jax.experimental.pallas import tpu as pltpu


def _round_up(n, m):
    return ((n + m - 1) // m) * m


def embedding_kernel(patches_ref, w_ref, b_ref, cls_ref, pos_ref, o_ref):
    # patches_ref: (1, TILE_T, Kp)  compute dtype  im2col'd patch vectors
    # w_ref:       (Kp, Ep)         compute dtype  flattened conv weight (resident)
    # b_ref:       (1, Ep)          f32            conv bias (resident)
    # cls_ref:     (1, Ep)          f32            cls token (resident)
    # pos_ref:     (TILE_T, Ep)     f32            positional-embedding slice
    # o_ref:       (1, TILE_T, Ep)
    proj = jnp.dot(patches_ref[0], w_ref[...],
                   preferred_element_type=jnp.float32)           # (TILE_T, Ep) f32
    o_ref[0] = (proj + b_ref[...] + pos_ref[...]).astype(o_ref.dtype)

    # Global token 0 is the cls token; it lives only in the first token tile.
    @pl.when(pl.program_id(0) == 0)
    def _():
        o_ref[0, 0:1, :] = (cls_ref[...] + pos_ref[0:1, :]).astype(o_ref.dtype)


def embedding_layer(x, params, patch_size, *, tile_tokens=512,
                    compute_dtype=jnp.bfloat16, out_dtype=None,
                    lane_align=128):
    """Pallas implementation of EmbeddingLayer.forward.

    x:      (B, C, H, W) float32
    params: conv_w (E, C, P, P), conv_b (E,), cls_token (1, 1, E),
            pos_embed (1, num_tokens, E)
    """
    B, C, H, W = x.shape
    P = patch_size
    Hp, Wp = H // P, W // P
    num_patches = Hp * Wp
    num_tokens = num_patches + 1
    E = params["conv_w"].shape[0]
    K = C * P * P
    out_dtype = x.dtype if out_dtype is None else out_dtype

    cd_size = jnp.dtype(compute_dtype).itemsize
    out_size = jnp.dtype(out_dtype).itemsize
    # Sub-32-bit dtypes pack along sublanes: round row tiles to 16 for bf16.
    sublane = max(8 * (4 // cd_size), 8 * (4 // out_size), 8)
    Kp = _round_up(K, lane_align)     # lane-align the contraction dim
    Ep = _round_up(E, lane_align)     # lane-dense weight columns / output stores

    # ---- token tiling: minimize padding of num_tokens, keep grid shardable ----
    n_tiles = max(-(-num_tokens // tile_tokens), 2 if B == 1 else 1)
    if num_tokens < 2 * sublane:
        n_tiles = 1
    tile_t = _round_up(-(-num_tokens // n_tiles), sublane)
    t_pad = tile_t * n_tiles

    # ---- wrapper-side layout plumbing (single fused XLA pass, no compute) ----
    # im2col: (B, C, H, W) -> (B, num_patches, K) with (c, kh, kw) ordering,
    # matching Conv2d's contraction order; cast + pad fuse into the same pass.
    patches = x.reshape(B, C, Hp, P, Wp, P).transpose(0, 2, 4, 1, 3, 5)
    patches = patches.reshape(B, num_patches, K).astype(compute_dtype)
    # Token-space layout: row 0 = dummy slot for cls, rows 1..num_patches are
    # the patches, trailing rows / lanes are zero padding.
    patches_tok = jnp.pad(patches,
                          ((0, 0), (1, t_pad - num_tokens), (0, Kp - K)))

    w2d = jnp.pad(params["conv_w"].reshape(E, K).astype(compute_dtype),
                  ((0, Ep - E), (0, Kp - K))).T                       # (Kp, Ep)
    b2d = jnp.pad(params["conv_b"].reshape(1, E),
                  ((0, 0), (0, Ep - E))).astype(jnp.float32)
    cls2d = jnp.pad(params["cls_token"].reshape(1, E),
                    ((0, 0), (0, Ep - E))).astype(jnp.float32)
    pos2d = jnp.pad(params["pos_embed"].reshape(num_tokens, E),
                    ((0, t_pad - num_tokens), (0, Ep - E))).astype(jnp.float32)

    # Tokens outer, batch inner: the pos-embed block index is constant across
    # the inner loop, so it is DMA'd once per token tile (not B times).
    grid = (n_tiles, B)

    in_specs = [
        pl.BlockSpec((1, tile_t, Kp), lambda t, b: (b, t, 0)),   # patches
        pl.BlockSpec((Kp, Ep),        lambda t, b: (0, 0)),      # weight (resident)
        pl.BlockSpec((1, Ep),         lambda t, b: (0, 0)),      # bias   (resident)
        pl.BlockSpec((1, Ep),         lambda t, b: (0, 0)),      # cls    (resident)
        pl.BlockSpec((tile_t, Ep),    lambda t, b: (t, 0)),      # pos slice
    ]
    out_specs = pl.BlockSpec((1, tile_t, Ep), lambda t, b: (b, t, 0))

    cost = pl.CostEstimate(
        flops=int(2 * B * t_pad * Kp * Ep),
        transcendentals=0,
        bytes_accessed=int(B * t_pad * Kp * cd_size        # patches read
                           + Kp * Ep * cd_size             # weight read once
                           + t_pad * Ep * 4                # pos read once per tile
                           + 2 * Ep * 4                    # bias + cls
                           + B * t_pad * Ep * out_size),   # output write
    )

    # VMEM budget: double-buffered patches / pos / output tiles + resident
    # weight + small bias/cls blocks.  Keep within the default scoped limit on
    # all generations (incl. 64 MiB-VMEM v7x) but raise it if tiles need it.
    vmem_est = (2 * tile_t * Kp * cd_size
                + 2 * Kp * Ep * cd_size
                + 2 * tile_t * Ep * 4
                + 2 * tile_t * Ep * out_size
                + 4 * Ep * 4)
    vmem_limit = int(min(max(vmem_est + (4 << 20), 32 << 20), 48 << 20))

    out = pl.pallas_call(
        embedding_kernel,
        out_shape=jax.ShapeDtypeStruct((B, t_pad, Ep), out_dtype),
        grid_spec=pltpu.PrefetchScalarGridSpec(
            num_scalar_prefetch=0,
            grid=grid,
            in_specs=in_specs,
            out_specs=out_specs,
        ),
        compiler_params=pltpu.CompilerParams(
            dimension_semantics=("parallel", "parallel"),
            vmem_limit_bytes=vmem_limit),
        cost_estimate=cost,
    )(patches_tok, w2d, b2d, cls2d, pos2d)

    return out[:, :num_tokens, :E]


def reference_embedding(x, params, patch_size):
    # Pure-JAX reference mirroring the PyTorch forward exactly.
    B, C, H, W = x.shape
    E = params["conv_w"].shape[0]
    emb = jax.lax.conv_general_dilated(
        x, params["conv_w"],
        window_strides=(patch_size, patch_size),
        padding="VALID",
        dimension_numbers=("NCHW", "OIHW", "NCHW"))
    emb = emb + params["conv_b"].reshape(1, E, 1, 1)
    z = emb.reshape(B, E, -1).transpose(0, 2, 1)                  # (B, num_patches, E)
    cls = jnp.broadcast_to(params["cls_token"], (B, 1, E))
    z = jnp.concatenate([cls, z], axis=1)
    return z + params["pos_embed"]


def make_params(key, in_chans, embed_dim, img_size, patch_size):
    num_tokens = (img_size // patch_size) ** 2 + 1
    k1, k2, k3, k4 = jax.random.split(key, 4)
    return {
        "conv_w": 0.02 * jax.random.normal(
            k1, (embed_dim, in_chans, patch_size, patch_size), jnp.float32),
        "conv_b": 0.02 * jax.random.normal(k2, (embed_dim,), jnp.float32),
        "cls_token": 1e-6 * jax.random.normal(k3, (1, 1, embed_dim), jnp.float32),
        "pos_embed": 0.02 * jax.random.normal(
            k4, (1, num_tokens, embed_dim), jnp.float32),
    }


if __name__ == "__main__":
    # Small shapes: B=2, in_chans=3, img=16x16, patch=4 (-> 16 patches + cls
    # = 17 tokens), embed_dim=32.
    B, C, H, P, E = 2, 3, 16, 4, 32
    key = jax.random.PRNGKey(0)
    kx, kp = jax.random.split(key)
    x = jax.random.normal(kx, (B, C, H, H), jnp.float32)
    params = make_params(kp, C, E, H, P)

    ref = reference_embedding(x, params, P)

    # Default path: bf16 MXU operands, f32 accumulation (looser tolerance).
    out = jax.block_until_ready(embedding_layer(x, params, P))
    assert out.shape == ref.shape == (B, (H // P) ** 2 + 1, E)
    assert jnp.allclose(out, ref, atol=3e-2, rtol=3e-2), "bf16 mismatch vs reference"

    # f32-operand path for a tight numerical check of the kernel structure.
    out_f32 = jax.block_until_ready(
        embedding_layer(x, params, P, compute_dtype=jnp.float32))
    assert jnp.allclose(out_f32, ref, atol=1e-4, rtol=1e-4), "f32 mismatch vs reference"

    print("KERNEL_OK")
</pallas_src>

<mosaic_0001>
module attributes {stable_mosaic.version = 11 : i64} {
  func.func @embedding_kernel(%arg0: i32, %arg1: i32, %arg2: memref<1x32x128xbf16, #tpu.memory_space<vmem>>, %arg3: memref<128x128xbf16, #tpu.memory_space<vmem>>, %arg4: memref<1x128xf32, #tpu.memory_space<vmem>>, %arg5: memref<1x128xf32, #tpu.memory_space<vmem>>, %arg6: memref<32x128xf32, #tpu.memory_space<vmem>>, %arg7: memref<1x32x128xf32, #tpu.memory_space<vmem>>) attributes {dimension_semantics = [#tpu.dimension_semantics<parallel>, #tpu.dimension_semantics<parallel>], iteration_bounds = array<i64: 1, 2>, scalar_prefetch = 0 : i64, scratch_operands = 0 : i64, tpu.core_type = #tpu.core_type<tc>, window_params = [{transform_indices = @transform_0, window_bounds = array<i64: 1, 32, 128>}, {pipeline_mode = #tpu.pipeline_mode<synchronous>, transform_indices = @transform_1, window_bounds = array<i64: 128, 128>}, {pipeline_mode = #tpu.pipeline_mode<synchronous>, transform_indices = @transform_2, window_bounds = array<i64: 1, 128>}, {pipeline_mode = #tpu.pipeline_mode<synchronous>, transform_indices = @transform_3, window_bounds = array<i64: 1, 128>}, {transform_indices = @transform_4, window_bounds = array<i64: 32, 128>}, {transform_indices = @transform_5, window_bounds = array<i64: 1, 32, 128>}]} {
    %c0 = arith.constant 0 : index
    %c0_0 = arith.constant 0 : index
    %c0_1 = arith.constant 0 : index
    %0 = vector.load %arg2[%c0, %c0_0, %c0_1] : memref<1x32x128xbf16, #tpu.memory_space<vmem>>, vector<1x32x128xbf16>
    %1 = vector.shape_cast %0 : vector<1x32x128xbf16> to vector<32x128xbf16>
    %c0_2 = arith.constant 0 : index
    %c0_3 = arith.constant 0 : index
    %2 = vector.load %arg3[%c0_2, %c0_3] : memref<128x128xbf16, #tpu.memory_space<vmem>>, vector<128x128xbf16>
    %cst = arith.constant dense<0.000000e+00> : vector<32x128xf32>
    %3 = tpu.matmul %1, %2, %cst {dimension_numbers = #tpu.dot_dimension_numbers<[1], [0], [0], [1], [0, 0, 1, 1], [], []>} : vector<32x128xbf16>, vector<128x128xbf16>, vector<32x128xf32> -> vector<32x128xf32>
    %c0_4 = arith.constant 0 : index
    %c0_5 = arith.constant 0 : index
    %4 = vector.load %arg4[%c0_4, %c0_5] : memref<1x128xf32, #tpu.memory_space<vmem>>, vector<1x128xf32>
    %5 = vector.broadcast %4 : vector<1x128xf32> to vector<32x128xf32>
    %6 = arith.addf %3, %5 : vector<32x128xf32>
    %c0_6 = arith.constant 0 : index
    %c0_7 = arith.constant 0 : index
    %7 = vector.load %arg6[%c0_6, %c0_7] : memref<32x128xf32, #tpu.memory_space<vmem>>, vector<32x128xf32>
    %8 = arith.addf %6, %7 : vector<32x128xf32>
    %c0_8 = arith.constant 0 : index
    %c0_9 = arith.constant 0 : index
    %c0_10 = arith.constant 0 : index
    %9 = vector.load %arg7[%c0_8, %c0_9, %c0_10] : memref<1x32x128xf32, #tpu.memory_space<vmem>>, vector<1x32x128xf32>
    %10 = vector.shape_cast %9 : vector<1x32x128xf32> to vector<32x128xf32>
    %11 = vector.shape_cast %8 : vector<32x128xf32> to vector<1x32x128xf32>
    tpu.vector_store %arg7[%c0_8, %c0_9, %c0_10], %11 {strides = array<i32>} : memref<1x32x128xf32, #tpu.memory_space<vmem>>, vector<1x32x128xf32>,
    %c0_i32 = arith.constant 0 : i32
    %12 = arith.cmpi eq, %arg0, %c0_i32 : i32
    %13 = arith.extui %12 : i1 to i32
    %c0_i32_11 = arith.constant 0 : i32
    %14 = arith.cmpi ne, %13, %c0_i32_11 : i32
    scf.if %14 {
      %c0_12 = arith.constant 0 : index
      %c0_13 = arith.constant 0 : index
      %15 = vector.load %arg5[%c0_12, %c0_13] : memref<1x128xf32, #tpu.memory_space<vmem>>, vector<1x128xf32>
      %c0_14 = arith.constant 0 : index
      %c0_15 = arith.constant 0 : index
      %16 = vector.load %arg6[%c0_14, %c0_15] : memref<32x128xf32, #tpu.memory_space<vmem>>, vector<1x128xf32>
      %17 = arith.addf %15, %16 : vector<1x128xf32>
      %c0_16 = arith.constant 0 : index
      %c0_17 = arith.constant 0 : index
      %c0_18 = arith.constant 0 : index
      %18 = vector.load %arg7[%c0_16, %c0_17, %c0_18] : memref<1x32x128xf32, #tpu.memory_space<vmem>>, vector<1x1x128xf32>
      %19 = vector.shape_cast %18 : vector<1x1x128xf32> to vector<1x128xf32>
      %20 = vector.shape_cast %17 : vector<1x128xf32> to vector<1x1x128xf32>
      tpu.vector_store %arg7[%c0_16, %c0_17, %c0_18], %20 {strides = array<i32>} : memref<1x32x128xf32, #tpu.memory_space<vmem>>, vector<1x1x128xf32>,
    } else {
    }
    return
  }
  func.func @transform_0(%arg0: i32, %arg1: i32) -> (i32, i32, i32) {
    %c0_i32 = arith.constant 0 : i32
    %c0_i32_0 = arith.constant 0 : i32
    return %arg1, %arg0, %c0_i32 : i32, i32, i32
  }
  func.func @transform_1(%arg0: i32, %arg1: i32) -> (i32, i32) {
    %c0_i32 = arith.constant 0 : i32
    %c0_i32_0 = arith.constant 0 : i32
    %c0_i32_1 = arith.constant 0 : i32
    return %c0_i32, %c0_i32_0 : i32, i32
  }
  func.func @transform_2(%arg0: i32, %arg1: i32) -> (i32, i32) {
    %c0_i32 = arith.constant 0 : i32
    %c0_i32_0 = arith.constant 0 : i32
    %c0_i32_1 = arith.constant 0 : i32
    return %c0_i32, %c0_i32_0 : i32, i32
  }
  func.func @transform_3(%arg0: i32, %arg1: i32) -> (i32, i32) {
    %c0_i32 = arith.constant 0 : i32
    %c0_i32_0 = arith.constant 0 : i32
    %c0_i32_1 = arith.constant 0 : i32
    return %c0_i32, %c0_i32_0 : i32, i32
  }
  func.func @transform_4(%arg0: i32, %arg1: i32) -> (i32, i32) {
    %c0_i32 = arith.constant 0 : i32
    %c0_i32_0 = arith.constant 0 : i32
    return %arg0, %c0_i32 : i32, i32
  }
  func.func @transform_5(%arg0: i32, %arg1: i32) -> (i32, i32, i32) {
    %c0_i32 = arith.constant 0 : i32
    %c0_i32_0 = arith.constant 0 : i32
    return %arg1, %arg0, %c0_i32 : i32, i32, i32
  }
}

</mosaic_0001>

<bundles_post_ra>
// kernel: tpu_custom_call.1
= control target key start
LH: loop header
LB: loop body
LE: loop exit
PB: predicated region body
PF: predicated region fallthrough
CT: control target
= control target key end

     0   :  { %10 = vsyncpa [#allocation3], 0  ;;  %s1225_s0 = inlined_call_operand.hbm [shape: bf16[2,32,128], index: 0, kind: input, shape index: {}]   ;;  %s1226_s1 = inlined_call_operand.hbm [shape: bf16[128,128], index: 1, kind: input, shape index: {}]   ;;  %s1227_s2 = inlined_call_operand.vmem [shape: f32[1,128], index: 2, kind: input, shape index: {}]   ;;  %s1228_s3 = inlined_call_operand.vmem [shape: f32[1,128], index: 3, kind: input, shape index: {}]   ;;  %s1229_s4 = inlined_call_operand.hbm [shape: f32[32,128], index: 4, kind: input, shape index: {}]   ;;  %s1230_s5 = inlined_call_operand.hbm [shape: f32[2,32,128], index: 5, kind: output, shape index: {}]  }
   0x1   :  { %12 = vsyncpa [#allocation3 + $0x1], 0 }
   0x2   :  { %13 = vsyncpa [#allocation6], 0 }
   0x3   :  { %14 = vsyncpa [#allocation4], 0 }
   0x4   :  { %16 = vsyncpa [#allocation4 + $0x1], 0  ;;  %s957_s18 = smov 0   ;;  %s959_s19 = smov 0  }
   0x5   :  { %s961_s20 = smov 0   ;;  %s963_s21 = smov 0  }
   0x6   :  { %s965_s22 = smov 0   ;;  %s967_s23 = smov 0  }
   0x7 LB: > { %s582_s24 = sadd.s32 4294967295, %s915_s23   ;;  %s583_s25 = sadd.s32 4294967294, %s915_s23   ;;  %s915_s23 = sphi %s967_s23, %s22_s23   ;;  %s911_s22 = sphi %s965_s22, %s1254_s22   ;;  %s907_s21 = sphi %s963_s21, %s1253_s21   ;;  %s903_s20 = sphi %s961_s20, %s1252_s20   ;;  %s899_s19 = sphi %s959_s19, %s1251_s19   ;;  %s895_s18 = sphi %s957_s18, %s1250_s18  }
   0x8   : > { %p56_p0 = scmp.ne.s32.totalorder %s899_s19, %s895_s18  ;;  %p991_p1 = scmp.eq.s32.totalorder %s582_s24, 0 }
   0x9   : > { %p995_p2 = scmp.eq.s32.totalorder %s582_s24, 1  ;;  %p177_p3 = scmp.eq.s32.totalorder %s583_s25, 1 }
   0xa   : > { %s1236_s26 = scalar_select %p991_p1, 1, 0 }
   0xb   : > { %p1001_p4 = por %p991_p1, %p56_p0  ;;  %p584_p5 = scmp.ge.s32.totalorder %s915_s23, 1 }
   0xc   : > { %p1006_p6 = por %p177_p3, %p56_p0  ;;  %p184_p7 = scmp.lt.s32.totalorder %s915_s23, 3 }
   0xd   : > { %s1238_s28 = scalar_select %p1001_p4, 1, 0 }
   0xe   : > { %s1239_s29 = scalar_select %p1006_p6, 1, 0 }
   0xf   : > { %p1011_p8 = pnand %p584_p5, %p184_p7  ;;  %s917_s6 = smov [#allocation5]  }
  0x10   : > { %s196_s7 = sshll.u32 %s917_s6, 4  ;;  %s918_s9 = smov [#allocation7]   ;;  %s1015_s7 = int_to_ptr.vmem [resolvable:$true] %s196_s7 }
  0x11   : > { %p656_p9 = pneg %p1011_p8  ;;  %s218_s10 = sshll.u32 %s918_s9, 4  ;;  %s1026_s10 = int_to_ptr.vmem [resolvable:$true] %s218_s10 }
  0x12   : > { %s743_s13 = scalar_lea.hbm %s1226_s1, 1024 }
  0x13   : > { %p1022_p11 = pnand %p656_p9, %p991_p1  ;;  %p744_p12 = scmp.ne.s32.totalorder %s1226_s1, %s743_s13 }
  0x14   : > { %p750_p5 = scmp.lt.u32.totalorder %s743_s13, %s1226_s1 }
  0x15   : > { %p745_p13 = pneg %p1022_p11 }
  0x17   : > { %p746_p0 = pnand %p745_p13, %p744_p12 }
  0x19   : > { %p747_p3 = pneg %p746_p0 }
  0x1b   : > { %p752_p7 = pnand %p750_p5, %p747_p3 }
  0x1d   : > { %755 = shalt.err (!%p752_p7)
}
  0x1e   : > { %s756_s24 = scalar_lea.vmem %s1015_s7, 1024  ;;  %p764_p1 = scmp.lt.s32.totalorder %s1015_s7, %s1015_s7 }
  0x1f   : > { %p757_p9 = scmp.ne.s32.totalorder %s1015_s7, %s756_s24  ;;  %p765_p12 = scmp.lt.s32.totalorder %s756_s24, %s756_s24 }
  0x21   : > { %p759_p10 = pnand %p757_p9, %p745_p13  ;;  %p766_p0 = por %p765_p12, %p764_p1 }
  0x23   : > { %p760_p6 = pneg %p759_p10 }
  0x25   : > { %p767_p4 = pnand %p766_p0, %p760_p6 }
  0x27   : > { %770 = shalt.err (!%p767_p4)
}
  0x28   : > { %s1234_s25 = smov 64   ;;  %s920_s6 = smov 4  }
  0x29   : > { %659 = dma.hbm_to_vmem [thread:$0]  (!%p1022_p11), %s1226_s1, 1024, %s1015_s7, [#allocation6], %s1234_s25, %s1234_s25, %s920_s6  }
  0x2a   : > { %s771_s14 = scalar_lea.hbm %s1229_s4, 512 }
  0x2b   : > { %p772_p1 = scmp.ne.s32.totalorder %s1229_s4, %s771_s14  ;;  %p778_p10 = scmp.lt.u32.totalorder %s771_s14, %s1229_s4 }
  0x2d   : > { %p774_p4 = pnand %p772_p1, %p745_p13 }
  0x2f   : > { %p775_p6 = pneg %p774_p4 }
  0x31   : > { %p780_p3 = pnand %p778_p10, %p775_p6 }
  0x33   : > { %783 = shalt.err (!%p780_p3)
}
  0x34   : > { %s784_s7 = scalar_lea.vmem %s1026_s10, 512  ;;  %p792_p12 = scmp.lt.s32.totalorder %s1026_s10, %s1026_s10 }
  0x35   : > { %p785_p5 = scmp.ne.s32.totalorder %s1026_s10, %s784_s7  ;;  %p793_p0 = scmp.lt.s32.totalorder %s784_s7, %s784_s7 }
  0x37   : > { %p787_p7 = pnand %p785_p5, %p745_p13  ;;  %p794_p1 = por %p793_p0, %p792_p12 }
  0x39   : > { %p788_p9 = pneg %p787_p7 }
  0x3b   : > { %p795_p4 = pnand %p794_p1, %p788_p9 }
  0x3d   : > { %798 = shalt.err (!%p795_p4)
}
  0x3e   : > { %s921_s9 = smov 128   ;;  %s922_s11 = smov 8  }
  0x3f   : > { %662 = dma.hbm_to_vmem [thread:$0]  (!%p1022_p11), %s1229_s4, 512, %s1026_s10, [#allocation6], %s921_s9, %s921_s9, %s922_s11  }
  0x40   : > { %s31_s14 = sadd.s32 1, %s911_s22  ;;  %s43_s15 = sadd.s32 1, %s903_s20 }
  0x41   : > { %p32_p13 = scmp.ge.s32.totalorder %s31_s14, 2  ;;  %p50_p6 = scmp.ne.s32.totalorder %s903_s20, %s899_s19 }
  0x42   : > { %p51_p10 = scmp.eq.s32.totalorder %s915_s23, 0  ;;  %p673_p3 = scmp.lt.s32.totalorder %s915_s23, 2 }
  0x43   : > { %s1256_s14 = smov (%p32_p13, %s31_s14), 0  ;;  %p1093_p7 = por %p995_p2, %p50_p6 }
  0x44   : > { %p52_p5 = por %p51_p10, %p50_p6  ;;  %s38_s8 = ssub.s32 %s911_s22, %s1256_s14 }
  0x45   : > { %s1242_s16 = scalar_select %p1093_p7, 1, 0 }
  0x46   : > { %s232_s17 = sand.u32 1, %s903_s20   ;;  %p41_p9 = scmp.eq.s32.totalorder %s38_s8, 0 }
  0x47   : > { %s588_s10 = sshll.u32 %s232_s17, 4  ;;  %s612_s24 = sshll.u32 %s911_s22, 8 }
  0x48   : > { %s1102_s7 = scalar_select %p41_p9, %s903_s20, %s43_s15  }
  0x49   : > { %s1107_s12 = scalar_lea.hbm %s1225_s0, %s612_s24  ;;  %s236_s27 = scalar_lea.vmem [#allocation2], %s588_s10 }
  0x4a   : > { %s245_s13 = sshll.u32 %s236_s27, 4  ;;  %p1111_p2 = pnand %p673_p3, %p52_p5  ;;  %s1115_s13 = int_to_ptr.vmem [resolvable:$true] %s245_s13 }
  0x4b   : > { %s1117_s15 = scalar_lea.sflag [#allocation3], %s232_s17  ;;  %s799_s8 = scalar_lea.hbm %s1107_s12, 256 }
  0x4c   : > { %p800_p11 = scmp.ne.s32.totalorder %s1107_s12, %s799_s8  ;;  %p801_p12 = pneg %p1111_p2 }
  0x4d   : > { %s804_s9 = scalar_lea.hbm %s1225_s0, 512  ;;  %p805_p4 = scmp.lt.u32.totalorder %s1107_s12, %s1225_s0 }
  0x4e   : > { %p802_p0 = pnand %p801_p12, %p800_p11  ;;  %p806_p13 = scmp.lt.u32.totalorder %s804_s9, %s799_s8 }
  0x4f   : > { %p808_p10 = scmp.lt.u32.totalorder %s799_s8, %s1107_s12 }
  0x50   : > { %p803_p1 = pneg %p802_p0  ;;  %p807_p6 = por %p806_p13, %p805_p4 }
  0x52   : > { %p809_p3 = por %p808_p10, %p807_p6 }
  0x54   : > { %p810_p5 = pnand %p809_p3, %p803_p1 }
  0x56   : > { %813 = shalt.err (!%p810_p5)
}
  0x57   : > { %s814_s17 = scalar_lea.vmem %s1115_s13, 256  ;;  %s923_s10 = smov [#allocation2]  }
  0x58   : > { %p815_p9 = scmp.ne.s32.totalorder %s1115_s13, %s814_s17  ;;  %s819_s24 = sshll.u32 %s923_s10, 4  ;;  %s820_s24 = int_to_ptr.vmem [resolvable:$false] %s819_s24 }
  0x59   : > { %s821_s11 = scalar_lea.vmem %s820_s24, 512  ;;  %p822_p7 = scmp.lt.s32.totalorder %s1115_s13, %s820_s24 }
  0x5a   : > { %p817_p11 = pnand %p815_p9, %p801_p12  ;;  %p823_p4 = scmp.lt.s32.totalorder %s821_s11, %s814_s17 }
  0x5c   : > { %p818_p0 = pneg %p817_p11  ;;  %p824_p13 = por %p823_p4, %p822_p7 }
  0x5e   : > { %p825_p6 = pnand %p824_p13, %p818_p0 }
  0x60   : > { %828 = shalt.err (!%p825_p6)
}
  0x61   : > { %s1244_s8 = smov 64   ;;  %257 = sbr.rel (%p1011_p8) target bundleno = 375 (0x177), region = 40 }
  0x62   : > { %666 = dma.hbm_to_vmem [thread:$0]  (!%p1111_p2), %s1107_s12, 256, %s1115_s13, %s1117_s15, %s1244_s8, %s1244_s8, %s920_s6  }
  0x63   : > { %s1151_s9 = sand.u32 (!%p1011_p8), 1, %s899_s19   ;;  %p1245_p7 = scmp.ne.s32.totalorder (!%p1011_p8), %s1238_s28, 0 }
  0x64   : > { %s592_s27 = sshll.u32 (!%p1011_p8), %s1151_s9, 4  ;;  %s260_s17 = scalar_lea.sflag (!%p1011_p8), [#allocation3], %s1151_s9 }
  0x65   : > { %s263_s10 = scalar_lea.vmem (!%p1011_p8), [#allocation2], %s592_s27 }
  0x68   : > { %882 = dma.done.wait (%p1245_p7), %s260_s17, 256  }
  0x69   : > { %884 = vsyncadd (%p1245_p7), %s260_s17, 4294967040  ;;  %p1246_p12 = scmp.ne.s32.totalorder %s1236_s26, 0 }
  0x6b   : > { %886 = dma.done.wait (%p1246_p12), [#allocation6], 1536  }
  0x6c   : > { %888 = vsyncadd (%p1246_p12), [#allocation6], 4294965760  ;;  %v733_v0 = vld [vmem:[#allocation5] sm:$0xff]   ;;  %v734_v1 = vld [vmem:[#allocation5 + $0x8] sm:$0xff]   ;;  %s595_s26 = sshll.u32 %s1151_s9, 5  ;;  %s613_s15 = sshll.u32 %s907_s21, 9 }
  0x6d   : > { %624 = vmatprep.subr.bf16.mxu0 %v733_v0  ;;  %v735_v2 = vld [vmem:[#allocation5 + $0x10] sm:$0xff]   ;;  %v736_v3 = vld [vmem:[#allocation5 + $0x18] sm:$0xff]   ;;  %v737_v5 = vld [vmem:[#allocation5 + $0x20] sm:$0xff]   ;;  %s297_s12 = scalar_lea.vmem [#allocation8], %s595_s26  ;;  %s1176_s21 = scalar_lea.hbm %s1230_s5, %s613_s15 }
  0x6e   : > { %625 = vmatpush3.bf16.msra.mxu0 %v733_v0  ;;  %v741_v4 = vld [vmem:[%s263_s10] sm:$0xff]   ;;  %v738_v6 = vld [vmem:[#allocation5 + $0x28] sm:$0xff]   ;;  %v740_v8 = vld [vmem:[#allocation5 + $0x38] sm:$0xff]   ;;  %s474_s13 = sshll.u32 %s297_s12, 4  ;;  %s459_s8 = scalar_lea.sflag [#allocation4], %s1151_s9  ;;  %s1171_s13 = int_to_ptr.vmem [resolvable:$true] %s474_s13 }
  0x6f   : > { %626 = vmatprep.subr.bf16.mxu0 %v734_v1  ;;  %640 = vmatprep.mubr.bf16.mxu0 %v741_v4  ;;  %v739_v7 = vld [vmem:[#allocation5 + $0x30] sm:$0xff]   ;;  %v742_v9 = vld [vmem:[%s263_s10 + $0x8] sm:$0xff]   ;;  %v596_v10 = vld [vmem:[%s1227_s2] ss:$0 sm:$0xff]  ;;  %s829_s27 = scalar_lea.vmem %s1171_s13, 512  ;;  %p1247_p2 = scmp.ne.s32.totalorder %s1242_s16, 0 }
  0x70   : > { %v440_v12 = vld [vmem:[#allocation7 + $0x10] sm:$0xff]  ;;  %v454_v13 = vld [vmem:[%s1228_s3] sm:$0x1]  ;;  %v441_v20 = vld [vmem:[#allocation7 + $0x18] sm:$0xff]  ;;  %p830_p8 = scmp.ne.s32.totalorder %s1171_s13, %s829_s27  ;;  %s924_s17 = smov [#allocation8]  }
  0x71   : > { %v455_v14 = vld [vmem:[#allocation7] sm:$0x1]  ;;  %v439_v25 = vld [vmem:[#allocation7 + $0x8] sm:$0xff]  ;;  %s833_s10 = sshll.u32 %s924_s17, 4  ;;  %s834_s10 = int_to_ptr.vmem [resolvable:$false] %s833_s10 }
  0x72   : > { %627 = vmatpush3.bf16.msra.mxu0 %v734_v1  ;;  %v438_v17 = vld [vmem:[#allocation7] sm:$0xff]  ;;  %v456_v22 = vadd.f32 %v455_v14, %v454_v13  ;;  %p831_p1 = pnand %p830_p8, %p1247_p2  ;;  %s835_s26 = scalar_lea.vmem %s834_s10, 1024 }
  0x73   : > { %628 = vmatprep.subr.bf16.mxu0 %v735_v2  ;;  %p836_p3 = scmp.lt.s32.totalorder %s1171_s13, %s834_s10  ;;  %p837_p5 = scmp.lt.s32.totalorder %s835_s26, %s829_s27 }
  0x74   : > { %p832_p10 = pneg %p831_p1 }
  0x75   : > { %p838_p9 = por %p837_p5, %p836_p3 }
  0x76   : > { %629 = vmatpush3.bf16.msra.mxu0 %v735_v2 }
  0x77   : > { %630 = vmatprep.subr.bf16.mxu0 %v736_v3  ;;  %p839_p11 = pnand %p838_p9, %p832_p10 }
  0x7a   : > { %631 = vmatpush3.bf16.msra.mxu0 %v736_v3 }
  0x7b   : > { %632 = vmatprep.subr.bf16.mxu0 %v737_v5 }
  0x7e   : > { %633 = vmatpush3.bf16.msra.mxu0 %v737_v5 }
  0x7f   : > { %634 = vmatprep.subr.bf16.mxu0 %v738_v6 }
  0x82   : > { %635 = vmatpush3.bf16.msra.mxu0 %v738_v6 }
  0x83   : > { %636 = vmatprep.subr.bf16.mxu0 %v739_v7 }
  0x86   : > { %637 = vmatpush3.bf16.msra.mxu0 %v739_v7 }
  0x87   : > { %638 = vmatprep.subr.bf16.mxu0 %v740_v8 }
  0x8a   : > { %639 = vmatpush3.bf16.msra.mxu0 %v740_v8 }
  0x8d   : > { %641 = vmatmul.mubr.bf16.vlgmr.msra.gmra.mrb[0].mxu0 %v742_v9 }
 0x160   : > { %v642_v11 = vpop.f32.mrb[0].mxu0 }
 0x161   : > { %v432_v15 = vadd.f32 %v642_v11, %v596_v10  ;;  %v423_v16 = vpop.f32.mrb[1].mxu0 }
 0x162   : > { %v424_v18 = vadd.f32 %v596_v10, %v423_v16  ;;  %v643_v19 = vpop.f32.mrb[2].mxu0 }
 0x163   : > { %v444_v21 = vadd.f32 %v440_v12, %v432_v15  ;;  %v435_v23 = vadd.f32 %v643_v19, %v596_v10  ;;  %v426_v24 = vpop.f32.mrb[3].mxu0 }
 0x164   : > { %v442_v26 = vadd.f32 %v438_v17, %v424_v18  ;;  %v427_v27 = vadd.f32 %v596_v10, %v426_v24 }
 0x165   : > { %448 = vst [vmem:[%s297_s12 + $0x10] sm:$0xff] %v444_v21  ;;  %v445_v28 = vadd.f32 %v441_v20, %v435_v23 }
 0x166   : > { %446 = vst [vmem:[%s297_s12] sm:$0xff] %v442_v26  ;;  %v443_v29 = vadd.f32 %v439_v25, %v427_v27 }
 0x167   : > { %457 = vst [vmem:[%s297_s12] sm:$0x1] %v456_v22  ;;  %449 = vst [vmem:[%s297_s12 + $0x18] sm:$0xff] %v445_v28 }
 0x168   : > { %447 = vst [vmem:[%s297_s12 + $0x8] sm:$0xff] %v443_v29 }
 0x169   : > { %842 = shalt.err (!%p839_p11)
}
 0x16a   : > { %s843_s28 = scalar_lea.hbm %s1176_s21, 512  ;;  %s847_s6 = scalar_lea.hbm %s1230_s5, 1024 }
 0x16b   : > { %p844_p0 = scmp.ne.s32.totalorder %s1176_s21, %s843_s28  ;;  %p848_p6 = scmp.lt.u32.totalorder %s1176_s21, %s1230_s5 }
 0x16c   : > { %p849_p7 = scmp.lt.u32.totalorder %s847_s6, %s843_s28  ;;  %p851_p8 = scmp.lt.u32.totalorder %s843_s28, %s1176_s21 }
 0x16d   : > { %p845_p4 = pnand %p844_p0, %p1247_p2 }
 0x16e   : > { %p850_p12 = por %p849_p7, %p848_p6 }
 0x16f   : > { %p846_p13 = pneg %p845_p4 }
 0x170   : > { %p852_p1 = por %p851_p8, %p850_p12 }
 0x172   : > { %p853_p10 = pnand %p852_p1, %p846_p13 }
 0x174   : > { %856 = shalt.err (!%p853_p10)
}
 0x175   : > { %s925_s24 = smov 128   ;;  %s926_s11 = smov 8  }
 0x176   : > { %654 = dma.vmem_to_hbm [thread:$0]  (%p1247_p2), %s1171_s13, 512, %s1176_s21, %s459_s8, %s925_s24, %s925_s24, %s926_s11  }
 0x177 PF: > { %s489_s27 = sand.u32 1, %s895_s18   ;;  %p1248_p3 = scmp.ne.s32.totalorder %s1239_s29, 0 }
 0x178   : > { %p1249_p5 = scmp.ge.s32.totalorder %s915_s23, 2  ;;  %s490_s17 = scalar_lea.sflag [#allocation4], %s489_s27 }
 0x17a   : > { %p668_p9 = pnand %p1249_p5, %p1248_p3 }
 0x17c   : > { %890 = dma.done.wait (!%p668_p9), %s490_s17, 512  }
 0x17d   : > { %892 = vsyncadd (!%p668_p9), %s490_s17, 4294966784  ;;  %s22_s23 = sadd.s32 1, %s915_s23   ;;  %s1250_s18 = smov %s899_s19 }
 0x17e   : > { %p19_p11 = scmp.ge.s32.totalorder %s22_s23, 4   ;;  %s1251_s19 = smov %s903_s20 }
 0x17f   : > { %s1252_s20 = smov %s1102_s7  ;;  %s1253_s21 = smov %s911_s22 }
 0x180   : > { %s1254_s22 = smov %s1256_s14  ;;  %21 = sbr.rel (!%p19_p11) target bundleno = 7 (0x7), region = 98 }
 0x187   :  { %495 = vsyncpa [#allocation3], 1 }
 0x188   :  { %497 = vsyncpa [#allocation3 + $0x1], 1 }
 0x189   :  { %498 = vsyncpa [#allocation6], 1 }
 0x18a   :  { %499 = vsyncpa [#allocation4], 1 }
 0x18b   :  { %501 = vsyncpa [#allocation4 + $0x1], 1 }

</bundles_post_ra>
